<compile_context>
chip_gen: v6e
topology: v6e:2x2x1
jax: 0.10.0
libtpu: 0.0.40
codegen_flags: <defaults>
</compile_context>

<pallas_src>
import functools

import jax
import jax.numpy as jnp
from jax import lax
from jax.experimental import pallas as pl
from jax.experimental.pallas import tpu as pltpu

L2_EPS = 1e-12  # torch.nn.functional.normalize default eps


def _round_up(x: int, m: int) -> int:
    return ((x + m - 1) // m) * m


def _t2l_kernel(x_ref, w_ref, logits_ref, *wnorm_refs,
                embedding_normalization: bool, weight_normalization: bool):
    x = x_ref[...]
    if embedding_normalization:
        # x / max(||x||_2, eps)  ==  x * rsqrt(max(||x||^2, eps^2))
        row_ss = jnp.sum(x * x, axis=1, keepdims=True)
        x = x * lax.rsqrt(jnp.maximum(row_ss, L2_EPS * L2_EPS))

    w = w_ref[...]
    # MXU matmul on the raw weight block; f32 accumulation.
    logits = jnp.dot(x, w, preferred_element_type=jnp.float32)

    if weight_normalization:
        (wnorm_ref,) = wnorm_refs
        col_ss = jnp.sum(w * w, axis=0, keepdims=True)              # (1, bn)
        inv_col = lax.rsqrt(jnp.maximum(col_ss, L2_EPS * L2_EPS))   # (1, bn)
        # (X @ W) * diag(inv) == X @ (W * diag(inv)): scale the (N, bn)
        # result instead of the (K, bn) weight before the matmul.
        logits = logits * inv_col
        wnorm_ref[...] = (w * inv_col).astype(wnorm_ref.dtype)

    logits_ref[...] = logits.astype(logits_ref.dtype)


def transform_embedding_to_logit(x, weight, *, embedding_normalization=False,
                                 weight_normalization=False, block_n=256):
    """JAX/Pallas equivalent of TransformEmbeddingToLogit.forward.

    x:      (N, in_features)
    weight: (in_features, out_features)
    Returns (logits, weight_used).
    """
    n, k = x.shape
    kw, c = weight.shape
    assert k == kw, "x / weight in_features mismatch"

    # Lane-dense column block (multiple of 128); pad out_features if needed.
    bn = min(_round_up(block_n, 128), _round_up(c, 128))
    c_pad = _round_up(c, bn)
    w_pad = weight if c_pad == c else jnp.pad(weight, ((0, 0), (0, c_pad - c)))

    grid = (c_pad // bn,)

    kernel = functools.partial(
        _t2l_kernel,
        embedding_normalization=embedding_normalization,
        weight_normalization=weight_normalization,
    )

    in_specs = [
        pl.BlockSpec((n, k), lambda j: (0, 0)),    # x resident across the grid
        pl.BlockSpec((k, bn), lambda j: (0, j)),   # streamed weight columns
    ]
    logits_spec = pl.BlockSpec((n, bn), lambda j: (0, j))
    logits_shape = jax.ShapeDtypeStruct((n, c_pad), jnp.float32)

    if weight_normalization:
        out_shape = (logits_shape,
                     jax.ShapeDtypeStruct((k, c_pad), weight.dtype))
        out_specs = (logits_spec, pl.BlockSpec((k, bn), lambda j: (0, j)))
    else:
        out_shape = logits_shape
        out_specs = logits_spec

    out = pl.pallas_call(
        kernel,
        grid=grid,
        in_specs=in_specs,
        out_specs=out_specs,
        out_shape=out_shape,
        compiler_params=pltpu.CompilerParams(
            dimension_semantics=("parallel",)),  # v7x: 2 TCs split the columns
    )(x, w_pad)

    if weight_normalization:
        logits, wnorm = out
        return logits[:, :c], wnorm[:, :c]
    return out[:, :c], weight


def _reference(x, weight, embedding_normalization, weight_normalization):
    w = weight
    if embedding_normalization:
        x = x / jnp.maximum(jnp.linalg.norm(x, axis=1, keepdims=True), L2_EPS)
    if weight_normalization:
        w = w / jnp.maximum(jnp.linalg.norm(w, axis=0, keepdims=True), L2_EPS)
    return x @ w, w


if __name__ == "__main__":
    N, IN_FEATURES, OUT_FEATURES = 8, 128, 256

    key = jax.random.PRNGKey(0)
    kx, kw = jax.random.split(key)
    x = jax.random.normal(kx, (N, IN_FEATURES), jnp.float32)
    bound = (6.0 / OUT_FEATURES) ** 0.5   # kaiming-uniform-ish (fan_out)
    weight = jax.random.uniform(kw, (IN_FEATURES, OUT_FEATURES), jnp.float32,
                                -bound, bound)

    # Both normalizations on (two-output kernel variant), 2-block parallel grid.
    logits, w_used = transform_embedding_to_logit(
        x, weight, embedding_normalization=True, weight_normalization=True,
        block_n=128)
    jax.block_until_ready((logits, w_used))

    ref_logits, ref_w = _reference(x, weight, True, True)
    assert logits.shape == (N, OUT_FEATURES)
    assert w_used.shape == (IN_FEATURES, OUT_FEATURES)
    assert jnp.allclose(logits, ref_logits, atol=1e-4, rtol=1e-4)
    assert jnp.allclose(w_used, ref_w, atol=1e-5, rtol=1e-5)

    # Plain path (no normalization, single-output kernel variant).
    logits2, w2 = transform_embedding_to_logit(x, weight)
    jax.block_until_ready(logits2)
    assert jnp.allclose(logits2, x @ weight, atol=1e-4, rtol=1e-4)
    assert w2 is weight

    print("KERNEL_OK")
</pallas_src>

<mosaic_0001>
module attributes {stable_mosaic.version = 11 : i64} {
  func.func @_t2l_kernel(%arg0: i32, %arg1: memref<8x128xf32, #tpu.memory_space<vmem>>, %arg2: memref<128x128xf32, #tpu.memory_space<vmem>>, %arg3: memref<8x128xf32, #tpu.memory_space<vmem>>, %arg4: memref<128x128xf32, #tpu.memory_space<vmem>>) attributes {dimension_semantics = [#tpu.dimension_semantics<parallel>], iteration_bounds = array<i64: 2>, scalar_prefetch = 0 : i64, scratch_operands = 0 : i64, tpu.core_type = #tpu.core_type<tc>, window_params = [{pipeline_mode = #tpu.pipeline_mode<synchronous>, transform_indices = @transform_0, window_bounds = array<i64: 8, 128>}, {transform_indices = @transform_1, window_bounds = array<i64: 128, 128>}, {transform_indices = @transform_2, window_bounds = array<i64: 8, 128>}, {transform_indices = @transform_3, window_bounds = array<i64: 128, 128>}]} {
    %c0 = arith.constant 0 : index
    %c0_0 = arith.constant 0 : index
    %0 = vector.load %arg1[%c0, %c0_0] : memref<8x128xf32, #tpu.memory_space<vmem>>, vector<8x128xf32>
    %1 = arith.mulf %0, %0 : vector<8x128xf32>
    %cst = arith.constant dense<0.000000e+00> : vector<8xf32>
    %2 = vector.multi_reduction <add>, %1, %cst [1] : vector<8x128xf32> to vector<8xf32>
    %3 = vector.shape_cast %2 : vector<8xf32> to vector<8x1xf32>
    %cst_1 = arith.constant 1.000000e-24 : f32
    %4 = vector.broadcast %cst_1 : f32 to vector<8x1xf32>
    %5 = arith.maximumf %3, %4 : vector<8x1xf32>
    %6 = math.rsqrt %5 : vector<8x1xf32>
    %7 = vector.broadcast %6 : vector<8x1xf32> to vector<8x128xf32>
    %8 = arith.mulf %0, %7 : vector<8x128xf32>
    %c0_2 = arith.constant 0 : index
    %c0_3 = arith.constant 0 : index
    %9 = vector.load %arg2[%c0_2, %c0_3] : memref<128x128xf32, #tpu.memory_space<vmem>>, vector<128x128xf32>
    %cst_4 = arith.constant dense<0.000000e+00> : vector<8x128xf32>
    %10 = tpu.matmul %8, %9, %cst_4 {dimension_numbers = #tpu.dot_dimension_numbers<[1], [0], [0], [1], [0, 0, 1, 1], [], []>} : vector<8x128xf32>, vector<128x128xf32>, vector<8x128xf32> -> vector<8x128xf32>
    %11 = arith.mulf %9, %9 : vector<128x128xf32>
    %cst_5 = arith.constant dense<0.000000e+00> : vector<128xf32>
    %12 = vector.multi_reduction <add>, %11, %cst_5 [0] : vector<128x128xf32> to vector<128xf32>
    %13 = vector.shape_cast %12 : vector<128xf32> to vector<1x128xf32>
    %cst_6 = arith.constant 1.000000e-24 : f32
    %14 = vector.broadcast %cst_6 : f32 to vector<1x128xf32>
    %15 = arith.maximumf %13, %14 : vector<1x128xf32>
    %16 = math.rsqrt %15 : vector<1x128xf32>
    %17 = vector.broadcast %16 : vector<1x128xf32> to vector<8x128xf32>
    %18 = arith.mulf %10, %17 : vector<8x128xf32>
    %19 = vector.broadcast %16 : vector<1x128xf32> to vector<128x128xf32>
    %20 = arith.mulf %9, %19 : vector<128x128xf32>
    %c0_7 = arith.constant 0 : index
    %c0_8 = arith.constant 0 : index
    %21 = vector.load %arg4[%c0_7, %c0_8] : memref<128x128xf32, #tpu.memory_space<vmem>>, vector<128x128xf32>
    tpu.vector_store %arg4[%c0_7, %c0_8], %20 {strides = array<i32>} : memref<128x128xf32, #tpu.memory_space<vmem>>, vector<128x128xf32>,
    %c0_9 = arith.constant 0 : index
    %c0_10 = arith.constant 0 : index
    %22 = vector.load %arg3[%c0_9, %c0_10] : memref<8x128xf32, #tpu.memory_space<vmem>>, vector<8x128xf32>
    tpu.vector_store %arg3[%c0_9, %c0_10], %18 {strides = array<i32>} : memref<8x128xf32, #tpu.memory_space<vmem>>, vector<8x128xf32>,
    return
  }
  func.func @transform_0(%arg0: i32) -> (i32, i32) {
    %c0_i32 = arith.constant 0 : i32
    %c0_i32_0 = arith.constant 0 : i32
    %c0_i32_1 = arith.constant 0 : i32
    return %c0_i32, %c0_i32_0 : i32, i32
  }
  func.func @transform_1(%arg0: i32) -> (i32, i32) {
    %c0_i32 = arith.constant 0 : i32
    %c0_i32_0 = arith.constant 0 : i32
    return %c0_i32, %arg0 : i32, i32
  }
  func.func @transform_2(%arg0: i32) -> (i32, i32) {
    %c0_i32 = arith.constant 0 : i32
    %c0_i32_0 = arith.constant 0 : i32
    return %c0_i32, %arg0 : i32, i32
  }
  func.func @transform_3(%arg0: i32) -> (i32, i32) {
    %c0_i32 = arith.constant 0 : i32
    %c0_i32_0 = arith.constant 0 : i32
    return %c0_i32, %arg0 : i32, i32
  }
}

</mosaic_0001>

<bundles_post_ra>
// kernel: tpu_custom_call.1
= control target key start
LH: loop header
LB: loop body
LE: loop exit
PB: predicated region body
PF: predicated region fallthrough
CT: control target
= control target key end

     0   :  { %9 = vsyncpa [#allocation3], 0  ;;  %s1223_s0 = inlined_call_operand.hbm [shape: f32[8,128], index: 0, kind: input, shape index: {}]   ;;  %s1224_s1 = inlined_call_operand.hbm [shape: f32[128,256], index: 1, kind: input, shape index: {}]   ;;  %s1225_s2 = inlined_call_operand.hbm [shape: f32[8,256], index: 2, kind: output, shape index: {0}]   ;;  %s1226_s3 = inlined_call_operand.hbm [shape: f32[128,256], index: 3, kind: output, shape index: {1}]  }
   0x1   :  { %10 = vsyncpa [#allocation6], 0 }
   0x2   :  { %12 = vsyncpa [#allocation6 + $0x1], 0 }
   0x3   :  { %13 = vsyncpa [#allocation4], 0 }
   0x4   :  { %15 = vsyncpa [#allocation4 + $0x1], 0 }
   0x5   :  { %16 = vsyncpa [#allocation9], 0 }
   0x6   :  { %18 = vsyncpa [#allocation9 + $0x1], 0  ;;  %s855_s12 = smov 0   ;;  %s857_s13 = smov 0  }
   0x7   :  { %s859_s14 = smov 0   ;;  %s861_s15 = smov 0  }
   0x8 LB: > { %s876_s16 = sadd.s32 4294967295, %s821_s15   ;;  %s526_s17 = sadd.s32 4294967294, %s821_s15   ;;  %s821_s15 = sphi %s861_s15, %s1249_s15   ;;  %s817_s14 = sphi %s859_s14, %s1248_s14   ;;  %s813_s13 = sphi %s857_s13, %s1247_s13   ;;  %s809_s12 = sphi %s855_s12, %s1246_s12  }
   0x9   : > { %s880_s18 = sadd.s32 1, %s821_s15   ;;  %s52_s19 = sadd.s32 1, %s817_s14 }
   0xa   : > { %s49_s20 = ssub.s32 %s821_s15, %s880_s18  ;;  %p59_p0 = scmp.ne.s32.totalorder %s817_s14, %s813_s13 }
   0xb   : > { %p50_p1 = scmp.eq.s32.totalorder %s49_s20, 0  ;;  %p60_p2 = scmp.eq.s32.totalorder %s821_s15, 0 }
   0xc   : > { %p65_p3 = scmp.ne.s32.totalorder %s813_s13, %s809_s12  ;;  %p1227_p4 = scmp.eq.s32.totalorder %s876_s16, 0 }
   0xd   : > { %s892_s21 = scalar_select %p50_p1, %s817_s14, %s52_s19  }
   0xe   : > { %p894_p5 = por %p60_p2, %p59_p0  ;;  %p900_p6 = por %p1227_p4, %p65_p3 }
   0xf   : > { %p89_p7 = scmp.eq.s32.totalorder %s876_s16, 1  ;;  %p95_p8 = scmp.eq.s32.totalorder %s526_s17, 1 }
  0x10   : > { %s1232_s23 = scalar_select %p900_p6, 1, 0 }
  0x11   : > { %p527_p9 = scmp.ge.s32.totalorder %s821_s15, 1  ;;  %p128_p10 = scmp.lt.s32.totalorder %s821_s15, 3 }
  0x12   : > { %p907_p11 = por %p89_p7, %p59_p0  ;;  %p911_p12 = por %p95_p8, %p65_p3 }
  0x13   : > { %p915_p13 = pnand %p527_p9, %p128_p10  ;;  %s823_s27 = smov [#allocation2]  }
  0x14   : > { %s1233_s24 = scalar_select %p907_p11, 1, 0 }
  0x15   : > { %s1234_s25 = scalar_select %p911_p12, 1, 0 }
  0x16   : > { %s1235_s26 = scalar_select %p915_p13, 1, 0 }
  0x17   : > { %p605_p2 = pneg %p915_p13  ;;  %s141_s28 = sshll.u32 %s823_s27, 4  ;;  %s142_s28 = int_to_ptr.vmem [resolvable:$true] %s141_s28 }
  0x18   : > { %p621_p4 = scmp.lt.s32.totalorder %s821_s15, 2  ;;  %p1236_p0 = scmp.eq.s32.totalorder %s876_s16, 0 }
  0x19   : > { %s152_s30 = sand.u32 1, %s817_s14   ;;  %s680_s6 = scalar_lea.vmem %s142_s28, 128 }
  0x1a   : > { %p925_p7 = pnand %p605_p2, %p1236_p0  ;;  %p932_p3 = pnand %p621_p4, %p894_p5 }
  0x1b   : > { %s530_s5 = sshll.u32 %s152_s30, 7  ;;  %p681_p9 = scmp.ne.s32.totalorder %s142_s28, %s680_s6 }
  0x1c   : > { %p671_p8 = pneg %p925_p7  ;;  %p688_p12 = scmp.lt.s32.totalorder %s142_s28, %s142_s28 }
  0x1d   : > { %p689_p11 = scmp.lt.s32.totalorder %s680_s6, %s680_s6 }
  0x1e   : > { %p683_p10 = pnand %p681_p9, %p671_p8 }
  0x1f   : > { %p690_p2 = por %p689_p11, %p688_p12 }
  0x20   : > { %p684_p1 = pneg %p683_p10 }
  0x22   : > { %p691_p0 = pnand %p690_p2, %p684_p1 }
  0x24   : > { %694 = shalt.err (!%p691_p0)
}
  0x25   : > { %608 = dma.hbm_to_vmem [thread:$0]  (!%p925_p7), %s1223_s0, 128, %s142_s28, [#allocation3]  }
  0x26   : > { %s531_s9 = sshll.u32 %s821_s15, 7  ;;  %s156_s10 = scalar_lea.vmem [#allocation5], %s530_s5 }
  0x27   : > { %s162_s11 = sshll.u32 %s156_s10, 4  ;;  %s947_s20 = scalar_lea.hbm %s1224_s1, %s531_s9  ;;  %s949_s11 = int_to_ptr.vmem [resolvable:$true] %s162_s11 }
  0x28   : > { %s951_s22 = scalar_lea.sflag [#allocation6], %s152_s30  ;;  %s695_s27 = scalar_lea.hbm %s947_s20, 2048 }
  0x29   : > { %p696_p4 = scmp.ne.s32.totalorder %s947_s20, %s695_s27  ;;  %p697_p5 = pneg %p932_p3 }
  0x2a   : > { %s700_s5 = scalar_lea.hbm %s1224_s1, 4096  ;;  %p701_p1 = scmp.lt.s32.totalorder %s947_s20, %s1224_s1 }
  0x2b   : > { %p698_p11 = pnand %p697_p5, %p696_p4  ;;  %p702_p7 = scmp.lt.s32.totalorder %s700_s5, %s695_s27 }
  0x2d   : > { %p699_p12 = pneg %p698_p11  ;;  %p703_p8 = por %p702_p7, %p701_p1 }
  0x2f   : > { %p704_p9 = pnand %p703_p8, %p699_p12 }
  0x31   : > { %707 = shalt.err (!%p704_p9)
}
  0x32   : > { %s708_s30 = scalar_lea.vmem %s949_s11, 2048  ;;  %s824_s8 = smov [#allocation5]  }
  0x33   : > { %p709_p10 = scmp.ne.s32.totalorder %s949_s11, %s708_s30  ;;  %s713_s9 = sshll.u32 %s824_s8, 4  ;;  %s714_s9 = int_to_ptr.vmem [resolvable:$false] %s713_s9 }
  0x34   : > { %s715_s10 = scalar_lea.vmem %s714_s9, 4096  ;;  %p716_p4 = scmp.lt.s32.totalorder %s949_s11, %s714_s9 }
  0x35   : > { %p711_p2 = pnand %p709_p10, %p697_p5  ;;  %p717_p11 = scmp.lt.s32.totalorder %s715_s10, %s708_s30 }
  0x37   : > { %p712_p0 = pneg %p711_p2  ;;  %p718_p6 = por %p717_p11, %p716_p4 }
  0x39   : > { %p719_p13 = pnand %p718_p6, %p712_p0 }
  0x3b   : > { %722 = shalt.err (!%p719_p13)
}
  0x3c   : > { %s825_s17 = smov 256   ;;  %s826_s19 = smov 128  }
  0x3d   : > { %s827_s27 = smov 8   ;;  %p1239_p5 = scmp.ne.s32.totalorder %s1235_s26, 0 }
  0x3e   : > { %612 = dma.hbm_to_vmem [thread:$0]  (!%p932_p3), %s947_s20, 2048, %s949_s11, %s951_s22, %s825_s17, %s826_s19, %s827_s27  }
  0x3f   : > { %174 = sbr.rel (%p1239_p5) target bundleno = 440 (0x1b8), region = 28  ;;  %p1240_p12 = scmp.eq.s32.totalorder (!%p1239_p5), %s876_s16, 0 }
  0x44   : > { %792 = dma.done.wait (%p1240_p12), [#allocation3], 128   ;;  %p1241_p1 = pmov %p1240_p12 }
  0x45   : > { %s979_s28 = sand.u32 1, %s813_s13   ;;  %p1242_p6 = scmp.ne.s32.totalorder %s1232_s23, 0 }
  0x46   : > { %794 = vsyncadd (%p1241_p1), [#allocation3], 4294967168  ;;  %s534_s29 = sshll.u32 %s979_s28, 7  ;;  %s181_s5 = scalar_lea.sflag [#allocation6], %s979_s28 }
  0x47   : > { %s985_s4 = scalar_lea.vmem [#allocation5], %s534_s29 }
  0x48   : > { %796 = dma.done.wait (%p1242_p6), %s181_s5, 2048  }
  0x49   : > { %798 = vsyncadd (%p1242_p6), %s181_s5, 4294965248  ;;  %v828_v0 = vmov 0.0   ;;  %v992_v1 = vld [vmem:[#allocation2] sm:$0xff]  ;;  %v998_v3 = vld [vmem:[%s985_s4 + $0x70] sm:$0xff]  ;;  %vm829_vm0 = vmmov 0   ;;  %s1103_s23 = scalar_lea.vmem [#allocation8], %s534_s29 }
  0x4a   : > { %560 = vmatprep.subr.mxu0 %v828_v0  ;;  %v995_v2 = vld [vmem:[%s985_s4 + $0x78] sm:$0xff]  ;;  %v213_v4 = vmul.f32 %v992_v1, %v992_v1  ;;  %v1005_v5 = vld [vmem:[%s985_s4 + $0x68] sm:$0xff]  ;;  %v1010_v6 = vld [vmem:[%s985_s4 + $0x60] sm:$0xff]  ;;  %592 = vmatprep.mubr.msk.f32.mxu0 %vm829_vm0, %v828_v0  ;;  %v319_v44 = vmul.f32 %v998_v3, %v998_v3  ;;  %s539_s26 = sshll.u32 %s876_s16, 7  ;;  %s409_s6 = sshll.u32 %s1103_s23, 4  ;;  %s1154_s6 = int_to_ptr.vmem [resolvable:$true] %s409_s6 }
  0x4b   : > { %561 = vmatpush3.msra.mxu0 %v995_v2  ;;  %v1015_v7 = vld [vmem:[%s985_s4 + $0x58] sm:$0xff]  ;;  %v1020_v8 = vld [vmem:[%s985_s4 + $0x50] sm:$0xff]  ;;  %v1026_v9 = vld [vmem:[%s985_s4 + $0x48] sm:$0xff]  ;;  %v317_v40 = vmul.f32 %v1010_v6, %v1010_v6  ;;  %v318_v42 = vmul.f32 %v1005_v5, %v1005_v5  ;;  %v320_v46 = vmul.f32 %v995_v2, %v995_v2  ;;  %s1143_s22 = scalar_lea.hbm %s1226_s3, %s539_s26  ;;  %s384_s7 = scalar_lea.sflag [#allocation9], %s979_s28 }
  0x4c   : > { %562 = vmatprep.subr.mxu0 %v828_v0  ;;  %214 = vadd.xlane.f32.xlu0 %v213_v4  ;;  %v1031_v10 = vld [vmem:[%s985_s4 + $0x40] sm:$0xff]  ;;  %v1036_v11 = vld [vmem:[%s985_s4 + $0x38] sm:$0xff]  ;;  %v1040_v12 = vld [vmem:[%s985_s4 + $0x30] sm:$0xff]  ;;  %v314_v34 = vmul.f32 %v1026_v9, %v1026_v9  ;;  %v315_v36 = vmul.f32 %v1020_v8, %v1020_v8  ;;  %v316_v38 = vmul.f32 %v1015_v7, %v1015_v7  ;;  %s723_s30 = scalar_lea.vmem %s1154_s6, 2048  ;;  %p1243_p3 = scmp.ne.s32.totalorder %s1233_s24, 0 }
  0x4d   : > { %563 = vmatpush3.msra.mxu0 %v998_v3  ;;  %v1043_v13 = vld [vmem:[%s985_s4] sm:$0xff]  ;;  %v1046_v14 = vld [vmem:[%s985_s4 + $0x8] sm:$0xff]  ;;  %v221_v15 = vld [vmem:[%s985_s4 + $0x10] sm:$0xff]  ;;  %v311_v28 = vmul.f32 %v1040_v12, %v1040_v12  ;;  %v312_v30 = vmul.f32 %v1036_v11, %v1036_v11  ;;  %v313_v32 = vmul.f32 %v1031_v10, %v1031_v10  ;;  %p724_p13 = scmp.ne.s32.totalorder %s1154_s6, %s723_s30  ;;  %s830_s8 = smov [#allocation8]  }
  0x4e   : > { %564 = vmatprep.subr.mxu0 %v828_v0  ;;  %v305_v16 = vmul.f32 %v1043_v13, %v1043_v13  ;;  %v306_v17 = vmul.f32 %v1046_v14, %v1046_v14  ;;  %v1057_v18 = vld [vmem:[%s985_s4 + $0x28] sm:$0xff]  ;;  %v222_v19 = vld [vmem:[%s985_s4 + $0x18] sm:$0xff]  ;;  %v307_v20 = vmul.f32 %v221_v15, %v221_v15  ;;  %v223_v23 = vld [vmem:[%s985_s4 + $0x20] sm:$0xff]  ;;  %s727_s9 = sshll.u32 %s830_s8, 4  ;;  %s728_s9 = int_to_ptr.vmem [resolvable:$false] %s727_s9 }
  0x4f   : > { %565 = vmatpush3.msra.mxu0 %v1005_v5  ;;  %v308_v21 = vmul.f32 %v222_v19, %v222_v19  ;;  %v309_v24 = vmul.f32 %v223_v23, %v223_v23  ;;  %v310_v26 = vmul.f32 %v1057_v18, %v1057_v18  ;;  %p725_p7 = pnand %p724_p13, %p1243_p3  ;;  %s729_s10 = scalar_lea.vmem %s728_s9, 4096 }
  0x50   : > { %566 = vmatprep.subr.mxu0 %v828_v0  ;;  %v321_v22 = vadd.f32 %v306_v17, %v305_v16  ;;  %p730_p9 = scmp.lt.s32.totalorder %s1154_s6, %s728_s9  ;;  %p731_p10 = scmp.lt.s32.totalorder %s729_s10, %s723_s30 }
  0x51   : > { %567 = vmatpush3.msra.mxu0 %v1010_v6  ;;  %p726_p8 = pneg %p725_p7 }
  0x52   : > { %568 = vmatprep.subr.mxu0 %v828_v0  ;;  %v322_v25 = vadd.f32 %v321_v22, %v307_v20  ;;  %p732_p2 = por %p731_p10, %p730_p9 }
  0x53   : > { %569 = vmatpush3.msra.mxu0 %v1015_v7 }
  0x54   : > { %570 = vmatprep.subr.mxu0 %v828_v0  ;;  %v323_v27 = vadd.f32 %v322_v25, %v308_v21  ;;  %p733_p0 = pnand %p732_p2, %p726_p8 }
  0x55   : > { %571 = vmatpush3.msra.mxu0 %v1020_v8 }
  0x56   : > { %572 = vmatprep.subr.mxu0 %v828_v0  ;;  %v324_v29 = vadd.f32 %v323_v27, %v309_v24 }
  0x57   : > { %573 = vmatpush3.msra.mxu0 %v1026_v9 }
  0x58   : > { %574 = vmatprep.subr.mxu0 %v828_v0  ;;  %v325_v31 = vadd.f32 %v324_v29, %v310_v26 }
  0x59   : > { %575 = vmatpush3.msra.mxu0 %v1031_v10 }
  0x5a   : > { %576 = vmatprep.subr.mxu0 %v828_v0  ;;  %v326_v33 = vadd.f32 %v325_v31, %v311_v28 }
  0x5b   : > { %577 = vmatpush3.msra.mxu0 %v1036_v11 }
  0x5c   : > { %578 = vmatprep.subr.mxu0 %v828_v0  ;;  %v327_v35 = vadd.f32 %v326_v33, %v312_v30 }
  0x5d   : > { %579 = vmatpush3.msra.mxu0 %v1040_v12 }
  0x5e   : > { %580 = vmatprep.subr.mxu0 %v828_v0  ;;  %v328_v37 = vadd.f32 %v327_v35, %v313_v32 }
  0x5f   : > { %581 = vmatpush3.msra.mxu0 %v1057_v18 }
  0x60   : > { %582 = vmatprep.subr.mxu0 %v828_v0  ;;  %v329_v39 = vadd.f32 %v328_v37, %v314_v34 }
  0x61   : > { %583 = vmatpush3.msra.mxu0 %v223_v23 }
  0x62   : > { %584 = vmatprep.subr.mxu0 %v828_v0  ;;  %v330_v41 = vadd.f32 %v329_v39, %v315_v36 }
  0x63   : > { %585 = vmatpush3.msra.mxu0 %v222_v19 }
  0x64   : > { %586 = vmatprep.subr.mxu0 %v828_v0  ;;  %v331_v43 = vadd.f32 %v330_v41, %v316_v38 }
  0x65   : > { %587 = vmatpush3.msra.mxu0 %v221_v15 }
  0x66   : > { %588 = vmatprep.subr.mxu0 %v828_v0  ;;  %v332_v45 = vadd.f32 %v331_v43, %v317_v40 }
  0x67   : > { %589 = vmatpush3.msra.mxu0 %v1046_v14 }
  0x68   : > { %590 = vmatprep.subr.mxu0 %v828_v0  ;;  %v333_v47 = vadd.f32 %v332_v45, %v318_v42 }
  0x69   : > { %591 = vmatpush3.msra.mxu0 %v1043_v13 }
  0x6a   : > { %v334_v48 = vadd.f32 %v333_v47, %v319_v44 }
  0x6c   : > { %v335_v49 = vadd.f32 %v334_v48, %v320_v46 }
  0x6e   : > { %v336_v50 = vrot.slane %v335_v49, 4 }
  0x70   : > { %v337_v51 = vadd.f32 %v336_v50, %v335_v49 }
  0x72   : > { %v338_v52 = vrot.slane %v337_v51, 2 }
  0x74   : > { %v339_v53 = vadd.f32 %v338_v52, %v337_v51 }
  0x76   : > { %v340_v54 = vrot.slane %v339_v53, 1 }
  0x78   : > { %v341_v55 = vadd.f32 %v340_v54, %v339_v53 }
  0x7a   : > { %v342_v56 = vmax.f32 %v341_v55, 1e-24 }
  0x7c   : > { %665 = vrsqrt.f32 %v342_v56 }
  0x89   : > { %v1093_v57 = vpop.eup %665 }
  0x8a   : > { %v348_v58 = vmul.f32 %v1093_v57, %v222_v19  ;;  %v347_v59 = vmul.f32 %v1093_v57, %v221_v15  ;;  %v346_v60 = vmul.f32 %v1093_v57, %v1046_v14  ;;  %v345_v61 = vmul.f32 %v1093_v57, %v1043_v13 }
  0x8b   : > { %v349_v13 = vmul.f32 %v1093_v57, %v223_v23  ;;  %v350_v14 = vmul.f32 %v1093_v57, %v1057_v18  ;;  %v351_v15 = vmul.f32 %v1093_v57, %v1040_v12  ;;  %v352_v16 = vmul.f32 %v1093_v57, %v1036_v11 }
  0x8c   : > { %364 = vst [vmem:[%s1103_s23 + $0x18] sm:$0xff] %v348_v58  ;;  %363 = vst [vmem:[%s1103_s23 + $0x10] sm:$0xff] %v347_v59  ;;  %v354_v17 = vmul.f32 %v1093_v57, %v1026_v9  ;;  %v355_v18 = vmul.f32 %v1093_v57, %v1020_v8  ;;  %v356_v12 = vmul.f32 %v1093_v57, %v1015_v7 }
  0x8d   : > { %362 = vst [vmem:[%s1103_s23 + $0x8] sm:$0xff] %v346_v60  ;;  %361 = vst [vmem:[%s1103_s23] sm:$0xff] %v345_v61  ;;  %v357_v11 = vmul.f32 %v1093_v57, %v1010_v6  ;;  %v359_v9 = vmul.f32 %v1093_v57, %v998_v3  ;;  %v360_v19 = vmul.f32 %v1093_v57, %v995_v2 }
  0x8e   : > { %365 = vst [vmem:[%s1103_s23 + $0x20] sm:$0xff] %v349_v13  ;;  %366 = vst [vmem:[%s1103_s23 + $0x28] sm:$0xff] %v350_v14 }
  0x8f   : > { %367 = vst [vmem:[%s1103_s23 + $0x30] sm:$0xff] %v351_v15  ;;  %368 = vst [vmem:[%s1103_s23 + $0x38] sm:$0xff] %v352_v16 }
  0x90   : > { %370 = vst [vmem:[%s1103_s23 + $0x48] sm:$0xff] %v354_v17  ;;  %371 = vst [vmem:[%s1103_s23 + $0x50] sm:$0xff] %v355_v18 }
  0x91   : > { %372 = vst [vmem:[%s1103_s23 + $0x58] sm:$0xff] %v356_v12  ;;  %373 = vst [vmem:[%s1103_s23 + $0x60] sm:$0xff] %v357_v11 }
  0x92   : > { %375 = vst [vmem:[%s1103_s23 + $0x70] sm:$0xff] %v359_v9  ;;  %376 = vst [vmem:[%s1103_s23 + $0x78] sm:$0xff] %v360_v19 }
  0xd5   : > { %v215_v62 = vpop.xlane.xlu0 %214 }
  0xd6   : > { %v216_v63 = vmax.f32 %v215_v62, 1e-24 }
  0xd8   : > { %667 = vrsqrt.f32 %v216_v63 }
  0xe5   : > { %v668_v0 = vpop.eup %667 }
  0xe6   : > { %v218_v4 = vmul.f32 %v668_v0, %v992_v1  ;;  %v353_v1 = vmul.f32 %v1093_v57, %v1031_v10  ;;  %v358_v10 = vmul.f32 %v1093_v57, %v1005_v5 }
  0xe8   : > { %593 = vmatmul.mubr.f32.vlgmr.msra.gmra.mxu0 %v218_v4  ;;  %369 = vst [vmem:[%s1103_s23 + $0x40] sm:$0xff] %v353_v1  ;;  %374 = vst [vmem:[%s1103_s23 + $0x68] sm:$0xff] %v358_v10 }
  0xe9   : > { %736 = shalt.err (!%p733_p0)
}
  0xea   : > { %s737_s17 = scalar_lea.hbm %s1143_s22, 2048  ;;  %s741_s29 = scalar_lea.hbm %s1226_s3, 4096 }
  0xeb   : > { %p738_p4 = scmp.ne.s32.totalorder %s1143_s22, %s737_s17  ;;  %p742_p12 = scmp.lt.s32.totalorder %s1143_s22, %s1226_s3 }
  0xec   : > { %p743_p1 = scmp.lt.s32.totalorder %s741_s29, %s737_s17 }
  0xed   : > { %p739_p11 = pnand %p738_p4, %p1243_p3 }
  0xee   : > { %p744_p6 = por %p743_p1, %p742_p12 }
  0xef   : > { %p740_p5 = pneg %p739_p11 }
  0xf1   : > { %p745_p13 = pnand %p744_p6, %p740_p5 }
  0xf3   : > { %748 = shalt.err (!%p745_p13)
}
  0xf4   : > { %s831_s23 = smov 128   ;;  %s832_s11 = smov 256  }
  0xf5   : > { %s833_s20 = smov 8   ;;  %s535_s30 = sshll.u32 %s979_s28, 3 }
  0xf6   : > { %602 = dma.vmem_to_hbm [thread:$0]  (%p1243_p3), %s1154_s6, 2048, %s1143_s22, %s384_s7, %s831_s23, %s832_s11, %s833_s20  }
  0xf7   : > { %s204_s8 = scalar_lea.vmem [#allocation7], %s535_s30  ;;  %s1186_s19 = scalar_lea.hbm %s1225_s2, %s539_s26 }
  0xf8   : > { %s397_s9 = sshll.u32 %s204_s8, 4  ;;  %s379_s27 = scalar_lea.sflag [#allocation4], %s979_s28  ;;  %s398_s9 = int_to_ptr.vmem [resolvable:$true] %s397_s9 }
  0xf9   : > { %s749_s29 = scalar_lea.vmem %s398_s9, 128  ;;  %s834_s22 = smov [#allocation7]  }
  0xfa   : > { %p750_p7 = scmp.ne.s32.totalorder %s398_s9, %s749_s29  ;;  %s753_s6 = sshll.u32 %s834_s22, 4  ;;  %s754_s6 = int_to_ptr.vmem [resolvable:$false] %s753_s6 }
  0xfb   : > { %s755_s7 = scalar_lea.vmem %s754_s6, 256  ;;  %p756_p10 = scmp.lt.s32.totalorder %s398_s9, %s754_s6 }
  0xfc   : > { %p751_p8 = pnand %p750_p7, %p1243_p3  ;;  %p757_p2 = scmp.lt.s32.totalorder %s755_s7, %s749_s29 }
  0xfe   : > { %p752_p9 = pneg %p751_p8  ;;  %p758_p0 = por %p757_p2, %p756_p10 }
 0x100   : > { %p759_p4 = pnand %p758_p0, %p752_p9 }
 0x1a8   : > { %v301_v2 = vpop.f32.mrf.mxu0 }
 0x1a9   : > { %v344_v3 = vmul.f32 %v1093_v57, %v301_v2 }
 0x1aa   : > { %v594_v5 = vpop.f32.mrf.mxu0 }
 0x1ab   : > { %377 = vst [vmem:[%s204_s8] sm:$0xff] %v344_v3 }
 0x1ac   : > { %762 = shalt.err (!%p759_p4)
}
 0x1ad   : > { %s763_s16 = scalar_lea.hbm %s1186_s19, 128  ;;  %s767_s5 = scalar_lea.hbm %s1225_s2, 256 }
 0x1ae   : > { %p764_p11 = scmp.ne.s32.totalorder %s1186_s19, %s763_s16  ;;  %p768_p1 = scmp.lt.s32.totalorder %s1186_s19, %s1225_s2 }
 0x1af   : > { %p769_p6 = scmp.lt.s32.totalorder %s767_s5, %s763_s16 }
 0x1b0   : > { %p765_p5 = pnand %p764_p11, %p1243_p3 }
 0x1b1   : > { %p770_p13 = por %p769_p6, %p768_p1 }
 0x1b2   : > { %p766_p12 = pneg %p765_p5 }
 0x1b4   : > { %p771_p7 = pnand %p770_p13, %p766_p12 }
 0x1b6   : > { %774 = shalt.err (!%p771_p7)
}
 0x1b7   : > { %601 = dma.vmem_to_hbm [thread:$0]  (%p1243_p3), %s398_s9, 128, %s1186_s19, %s379_s27  }
 0x1b8 PF: > { %s424_s11 = sand.u32 1, %s809_s12   ;;  %p1244_p8 = scmp.ne.s32.totalorder %s1234_s25, 0 }
 0x1b9   : > { %p1245_p9 = scmp.ge.s32.totalorder %s821_s15, 2  ;;  %s425_s20 = scalar_lea.sflag [#allocation4], %s424_s11 }
 0x1bb   : > { %p614_p10 = pnand %p1245_p9, %p1244_p8 }
 0x1bd   : > { %p615_p2 = pneg %p614_p10 }
 0x1bf   : > { %800 = dma.done.wait (%p615_p2), %s425_s20, 128  }
 0x1c0   : > { %802 = vsyncadd (%p615_p2), %s425_s20, 4294967168  ;;  %s434_s30 = scalar_lea.sflag [#allocation9], %s424_s11 }
 0x1c1   : > { %804 = dma.done.wait (%p615_p2), %s434_s30, 2048  }
 0x1c2   : > { %806 = vsyncadd (%p615_p2), %s434_s30, 4294965248  ;;  %p21_p3 = scmp.ge.s32.totalorder %s880_s18, 4   ;;  %s1246_s12 = smov %s813_s13 }
 0x1c3   : > { %s1247_s13 = smov %s817_s14  ;;  %s1248_s14 = smov %s892_s21 }
 0x1c4   : > { %s1249_s15 = smov %s880_s18  ;;  %23 = sbr.rel (!%p21_p3) target bundleno = 8 (0x8), region = 95 }
 0x1c9   :  { %439 = vsyncpa [#allocation3], 1 }
 0x1ca   :  { %441 = vsyncpa [#allocation3 + $0x1], 1 }
 0x1cb   :  { %442 = vsyncpa [#allocation6], 1 }
 0x1cc   :  { %444 = vsyncpa [#allocation6 + $0x1], 1 }
 0x1cd   :  { %445 = vsyncpa [#allocation4], 1 }
 0x1ce   :  { %447 = vsyncpa [#allocation4 + $0x1], 1 }
 0x1cf   :  { %448 = vsyncpa [#allocation9], 1 }
 0x1d0   :  { %450 = vsyncpa [#allocation9 + $0x1], 1 }

</bundles_post_ra>
